<compile_context>
chip_gen: v5e
topology: v5e:2x2
jax: 0.10.0
libtpu: 0.0.40
codegen_flags: <defaults>
</compile_context>

<pallas_src>
import functools

import jax
import jax.numpy as jnp
from jax.experimental import pallas as pl
from jax.experimental.pallas import tpu as pltpu


def _round_up(v, m):
    return ((v + m - 1) // m) * m


def _mlp_kernel(*refs, n_layers, has_means, has_cond, has_bias):
    """refs = (x, [prot_means], [cond], W0x, [W0c], W1..W_{L-1}, [bias], out)."""
    it = iter(refs[:-1])
    out_ref = refs[-1]

    x = next(it)[...]
    if has_means:                      # encoder with prot_means: x = x - prot_means
        x = x - next(it)[...]
    c = next(it)[...] if has_cond else None

    # Layer 0: (cat(x, cond) @ W0)  ==  x @ W0x + cond @ W0c.
    # Operands in native dtype (bf16 path on the MXU); f32 accumulation.
    w0x = next(it)[...]
    acc = jnp.dot(x, w0x, preferred_element_type=jnp.float32)
    if has_cond:
        w0c = next(it)[...]
        acc = acc + jnp.dot(c, w0c, preferred_element_type=jnp.float32)

    # Hidden layers (bias=False in the PyTorch module): ReLU then matmul.
    for _ in range(1, n_layers):
        w = next(it)[...]
        h = jnp.maximum(acc, 0.0).astype(w.dtype)
        acc = jnp.dot(h, w, preferred_element_type=jnp.float32)

    if has_bias:
        acc = acc + next(it)[...].astype(jnp.float32)

    out_ref[...] = acc.astype(out_ref.dtype)


def conditional_endecoder_forward(params, x, cond=None, *, is_encoder,
                                  prot_means=None, n_layers=1, block_batch=256):
    weights = params["weights"]            # list of (in, out) matrices
    bias = params["bias"]                  # (1, out) or None
    B, feat = x.shape
    has_means = is_encoder and prot_means is not None
    has_cond = cond is not None
    has_bias = bias is not None
    cdim = cond.shape[-1] if has_cond else 0
    out_dim = weights[-1].shape[-1]
    dtype = x.dtype
    itemsize = jnp.dtype(dtype).itemsize

    # ---- lane padding: every feature / hidden / output dim -> multiple of 128.
    feat_p = _round_up(feat, 128)
    cond_pdim = _round_up(cdim, 128) if has_cond else 0
    layer_out_p = [_round_up(w.shape[-1], 128) for w in weights]
    out_p = layer_out_p[-1]

    # Split first weight into x-part / cond-part rows (== cat-then-matmul).
    w0 = weights[0]
    w0x = w0[:feat, :]
    w0c = w0[feat:feat + cdim, :] if has_cond else None

    def _pad2d(a, rows, cols):
        return jnp.pad(a, ((0, rows - a.shape[0]), (0, cols - a.shape[1])))

    # In a real deployment the padded weight copies would be prepared once.
    w0x_p = _pad2d(w0x, feat_p, layer_out_p[0])
    w0c_p = _pad2d(w0c, cond_pdim, layer_out_p[0]) if has_cond else None
    ws_p = [_pad2d(w, layer_out_p[l], layer_out_p[l + 1])
            for l, w in enumerate(weights[1:])]
    bias_p = _pad2d(bias, 1, out_p) if has_bias else None

    # ---- batch tiling: big sublane tile (multiple of 8), pad B, parallel grid.
    bt = _round_up(min(block_batch, _round_up(B, 8)), 8)
    Bp = _round_up(B, bt)
    grid = (Bp // bt,)

    x_p = jnp.pad(x, ((0, Bp - B), (0, feat_p - feat)))
    cond_arr_p = (jnp.pad(cond, ((0, Bp - B), (0, cond_pdim - cdim)))
                  if has_cond else None)
    pm_p = (jnp.pad(jnp.asarray(prot_means, dtype).reshape(1, feat),
                    ((0, 0), (0, feat_p - feat)))
            if has_means else None)

    kernel = functools.partial(_mlp_kernel, n_layers=n_layers,
                               has_means=has_means, has_cond=has_cond,
                               has_bias=has_bias)

    # Advisory cost estimate (padded problem size).
    dims_chain = [feat_p + cond_pdim] + layer_out_p
    flops = 2 * Bp * sum(dims_chain[i] * dims_chain[i + 1]
                         for i in range(len(dims_chain) - 1))

    def _specs_and_inputs(single_buffer_consts):
        ckw = {}
        if single_buffer_consts:
            # Constant blocks (index map always (0,0)) need only one VMEM copy.
            ckw["pipeline_mode"] = pl.Buffered(1)

        def const_spec(shape):
            return pl.BlockSpec(shape, lambda i: (0, 0), **ckw)

        inputs = [x_p]
        in_specs = [pl.BlockSpec((bt, feat_p), lambda i: (i, 0))]
        if has_means:
            inputs.append(pm_p)
            in_specs.append(const_spec((1, feat_p)))
        if has_cond:
            inputs.append(cond_arr_p)
            in_specs.append(pl.BlockSpec((bt, cond_pdim), lambda i: (i, 0)))
        inputs.append(w0x_p)
        in_specs.append(const_spec(w0x_p.shape))
        if has_cond:
            inputs.append(w0c_p)
            in_specs.append(const_spec(w0c_p.shape))
        for w in ws_p:
            inputs.append(w)
            in_specs.append(const_spec(w.shape))
        if has_bias:
            inputs.append(bias_p)
            in_specs.append(const_spec(bias_p.shape))
        return inputs, in_specs

    def _call(single_buffer_consts):
        inputs, in_specs = _specs_and_inputs(single_buffer_consts)
        bytes_accessed = int(sum(a.size * a.dtype.itemsize for a in inputs)
                             + Bp * out_p * itemsize)

        # Rough resident VMEM need: constants once, per-tile buffers double
        # buffered, plus f32 intermediates; only raise the limit when required,
        # capped below v7x's 64 MiB physical VMEM.
        const_bytes = int(sum(a.size * a.dtype.itemsize
                              for a in inputs[1 + int(has_means) + int(has_cond):]))
        tile_bytes = (bt * feat_p + bt * cond_pdim + bt * out_p) * itemsize * 2
        work_bytes = bt * max(layer_out_p) * 4 * 2
        need = const_bytes + tile_bytes + work_bytes
        cp_kwargs = dict(dimension_semantics=("parallel",))
        if need > 24 * 1024 * 1024:
            cp_kwargs["vmem_limit_bytes"] = min(int(need * 1.5), 60 * 1024 * 1024)

        return pl.pallas_call(
            kernel,
            grid=grid,
            in_specs=in_specs,
            out_specs=pl.BlockSpec((bt, out_p), lambda i: (i, 0)),
            out_shape=jax.ShapeDtypeStruct((Bp, out_p), dtype),
            compiler_params=pltpu.CompilerParams(**cp_kwargs),
            cost_estimate=pl.CostEstimate(flops=int(flops), transcendentals=0,
                                          bytes_accessed=bytes_accessed),
        )(*inputs)

    try:
        out = _call(True)
    except Exception:
        # Fallback if the single-buffering hint (pipeline_mode / Buffered(1))
        # is not supported by this JAX build; correctness is unaffected.
        out = _call(False)

    return out[:B, :out_dim]


def init_params(key, in_dim, out_dim, is_encoder, h_dim=None, n_layers=1,
                prot_means=None, dtype=jnp.float32):
    """Deterministic init mimicking torch.nn.Linear defaults (U(-1/sqrt(fan_in), ...))."""
    if n_layers == 1:
        dims = [(in_dim, out_dim)]
    else:
        dims = ([(in_dim, h_dim)]
                + [(h_dim, h_dim)] * (n_layers - 2)
                + [(h_dim, out_dim)])
    weights = []
    for din, dout in dims:
        key, sub = jax.random.split(key)
        bound = 1.0 / (din ** 0.5)
        # Generated directly in (in, out) layout == torch weight.T
        weights.append(jax.random.uniform(sub, (din, dout), dtype, -bound, bound))

    last_has_bias = (not is_encoder) or (prot_means is None)
    bias = None
    if last_has_bias:
        din_last = dims[-1][0]
        bound = 1.0 / (din_last ** 0.5)
        key, sub = jax.random.split(key)
        bias = jax.random.uniform(sub, (1, out_dim), dtype, -bound, bound)
        if (not is_encoder) and (prot_means is not None):
            # last_layer.bias.data.copy_(prot_means)
            bias = jnp.asarray(prot_means, dtype).reshape(1, out_dim)
    return {"weights": weights, "bias": bias}


def reference_forward(params, x, cond, *, is_encoder, prot_means, n_layers):
    """Plain-JAX replica of the PyTorch forward (for correctness checking)."""
    if is_encoder and prot_means is not None:
        x = x - jnp.asarray(prot_means, x.dtype).reshape(1, -1)
    if cond is not None:
        x = jnp.concatenate([x, cond], axis=-1)
    ws = params["weights"]
    h = x
    for w in ws[:-1]:
        h = jnp.maximum(h @ w, 0.0)
    y = h @ ws[-1]
    if params["bias"] is not None:
        y = y + params["bias"]
    return y


if __name__ == "__main__":
    key = jax.random.PRNGKey(0)
    k_x, k_c, k_m, k_enc, k_dec, k_z, k_x2, k_c2 = jax.random.split(key, 8)

    B, FEAT, COND, H, LATENT = 16, 16, 8, 32, 4

    x = jax.random.normal(k_x, (B, FEAT), jnp.float32)
    cond = jax.random.normal(k_c, (B, COND), jnp.float32)
    prot_means = jax.random.normal(k_m, (FEAT,), jnp.float32)

    # --- Encoder: in_dim includes cond dim, 2 layers, no bias on last layer ---
    enc_params = init_params(k_enc, in_dim=FEAT + COND, out_dim=LATENT,
                             is_encoder=True, h_dim=H, n_layers=2,
                             prot_means=prot_means)
    z = conditional_endecoder_forward(enc_params, x, cond, is_encoder=True,
                                      prot_means=prot_means, n_layers=2)
    z = jax.block_until_ready(z)
    z_ref = reference_forward(enc_params, x, cond, is_encoder=True,
                              prot_means=prot_means, n_layers=2)
    assert z.shape == (B, LATENT)
    assert jnp.allclose(z, z_ref, rtol=1e-5, atol=1e-5)

    # --- Decoder: 1 layer, bias initialised to prot_means ---
    dec_params = init_params(k_dec, in_dim=LATENT + COND, out_dim=FEAT,
                             is_encoder=False, n_layers=1,
                             prot_means=prot_means)
    xr = conditional_endecoder_forward(dec_params, z, cond, is_encoder=False,
                                       prot_means=prot_means, n_layers=1)
    xr = jax.block_until_ready(xr)
    xr_ref = reference_forward(dec_params, z, cond, is_encoder=False,
                               prot_means=prot_means, n_layers=1)
    assert xr.shape == (B, FEAT)
    assert jnp.allclose(xr, xr_ref, rtol=1e-5, atol=1e-5)

    # --- Larger batch: exercises batch padding + multi-tile parallel grid ---
    B2 = 300
    x2 = jax.random.normal(k_x2, (B2, FEAT), jnp.float32)
    c2 = jax.random.normal(k_c2, (B2, COND), jnp.float32)
    z2 = conditional_endecoder_forward(enc_params, x2, c2, is_encoder=True,
                                       prot_means=prot_means, n_layers=2)
    z2 = jax.block_until_ready(z2)
    z2_ref = reference_forward(enc_params, x2, c2, is_encoder=True,
                               prot_means=prot_means, n_layers=2)
    assert z2.shape == (B2, LATENT)
    assert jnp.allclose(z2, z2_ref, rtol=1e-5, atol=1e-5)

    # --- bf16 path: operands stay bf16 on the MXU, accumulation is f32 ---
    dec_bf16 = {"weights": [w.astype(jnp.bfloat16) for w in dec_params["weights"]],
                "bias": dec_params["bias"].astype(jnp.bfloat16)}
    xr_bf16 = conditional_endecoder_forward(
        dec_bf16, z.astype(jnp.bfloat16), cond.astype(jnp.bfloat16),
        is_encoder=False, prot_means=prot_means, n_layers=1)
    xr_bf16 = jax.block_until_ready(xr_bf16)
    assert xr_bf16.shape == (B, FEAT)
    assert bool(jnp.all(jnp.isfinite(xr_bf16.astype(jnp.float32))))
    assert jnp.allclose(xr_bf16.astype(jnp.float32), xr_ref,
                        rtol=5e-2, atol=2e-1)

    print("KERNEL_OK")
</pallas_src>

<mosaic_0001>
module attributes {stable_mosaic.version = 11 : i64} {
  func.func @_mlp_kernel(%arg0: i32, %arg1: memref<16x128xf32, #tpu.memory_space<vmem>>, %arg2: memref<1x128xf32, #tpu.memory_space<vmem>>, %arg3: memref<16x128xf32, #tpu.memory_space<vmem>>, %arg4: memref<128x128xf32, #tpu.memory_space<vmem>>, %arg5: memref<128x128xf32, #tpu.memory_space<vmem>>, %arg6: memref<128x128xf32, #tpu.memory_space<vmem>>, %arg7: memref<16x128xf32, #tpu.memory_space<vmem>>) attributes {dimension_semantics = [#tpu.dimension_semantics<parallel>], iteration_bounds = array<i64: 1>, scalar_prefetch = 0 : i64, scratch_operands = 0 : i64, tpu.core_type = #tpu.core_type<tc>, window_params = [{transform_indices = @transform_0, window_bounds = array<i64: 16, 128>}, {pipeline_mode = #tpu.pipeline_mode<synchronous>, transform_indices = @transform_1, window_bounds = array<i64: 1, 128>}, {transform_indices = @transform_2, window_bounds = array<i64: 16, 128>}, {pipeline_mode = #tpu.pipeline_mode<synchronous>, transform_indices = @transform_3, window_bounds = array<i64: 128, 128>}, {pipeline_mode = #tpu.pipeline_mode<synchronous>, transform_indices = @transform_4, window_bounds = array<i64: 128, 128>}, {pipeline_mode = #tpu.pipeline_mode<synchronous>, transform_indices = @transform_5, window_bounds = array<i64: 128, 128>}, {transform_indices = @transform_6, window_bounds = array<i64: 16, 128>}]} {
    %c0 = arith.constant 0 : index
    %c0_0 = arith.constant 0 : index
    %0 = vector.load %arg1[%c0, %c0_0] : memref<16x128xf32, #tpu.memory_space<vmem>>, vector<16x128xf32>
    %c0_1 = arith.constant 0 : index
    %c0_2 = arith.constant 0 : index
    %1 = vector.load %arg2[%c0_1, %c0_2] : memref<1x128xf32, #tpu.memory_space<vmem>>, vector<1x128xf32>
    %2 = vector.broadcast %1 : vector<1x128xf32> to vector<16x128xf32>
    %3 = arith.subf %0, %2 : vector<16x128xf32>
    %c0_3 = arith.constant 0 : index
    %c0_4 = arith.constant 0 : index
    %4 = vector.load %arg3[%c0_3, %c0_4] : memref<16x128xf32, #tpu.memory_space<vmem>>, vector<16x128xf32>
    %c0_5 = arith.constant 0 : index
    %c0_6 = arith.constant 0 : index
    %5 = vector.load %arg4[%c0_5, %c0_6] : memref<128x128xf32, #tpu.memory_space<vmem>>, vector<128x128xf32>
    %cst = arith.constant dense<0.000000e+00> : vector<16x128xf32>
    %6 = tpu.matmul %3, %5, %cst {dimension_numbers = #tpu.dot_dimension_numbers<[1], [0], [0], [1], [0, 0, 1, 1], [], []>} : vector<16x128xf32>, vector<128x128xf32>, vector<16x128xf32> -> vector<16x128xf32>
    %c0_7 = arith.constant 0 : index
    %c0_8 = arith.constant 0 : index
    %7 = vector.load %arg5[%c0_7, %c0_8] : memref<128x128xf32, #tpu.memory_space<vmem>>, vector<128x128xf32>
    %cst_9 = arith.constant dense<0.000000e+00> : vector<16x128xf32>
    %8 = tpu.matmul %4, %7, %cst_9 {dimension_numbers = #tpu.dot_dimension_numbers<[1], [0], [0], [1], [0, 0, 1, 1], [], []>} : vector<16x128xf32>, vector<128x128xf32>, vector<16x128xf32> -> vector<16x128xf32>
    %9 = arith.addf %6, %8 : vector<16x128xf32>
    %c0_10 = arith.constant 0 : index
    %c0_11 = arith.constant 0 : index
    %10 = vector.load %arg6[%c0_10, %c0_11] : memref<128x128xf32, #tpu.memory_space<vmem>>, vector<128x128xf32>
    %cst_12 = arith.constant 0.000000e+00 : f32
    %11 = vector.broadcast %cst_12 : f32 to vector<16x128xf32>
    %12 = arith.maximumf %9, %11 : vector<16x128xf32>
    %cst_13 = arith.constant dense<0.000000e+00> : vector<16x128xf32>
    %13 = tpu.matmul %12, %10, %cst_13 {dimension_numbers = #tpu.dot_dimension_numbers<[1], [0], [0], [1], [0, 0, 1, 1], [], []>} : vector<16x128xf32>, vector<128x128xf32>, vector<16x128xf32> -> vector<16x128xf32>
    %c0_14 = arith.constant 0 : index
    %c0_15 = arith.constant 0 : index
    %14 = vector.load %arg7[%c0_14, %c0_15] : memref<16x128xf32, #tpu.memory_space<vmem>>, vector<16x128xf32>
    tpu.vector_store %arg7[%c0_14, %c0_15], %13 {strides = array<i32>} : memref<16x128xf32, #tpu.memory_space<vmem>>, vector<16x128xf32>,
    return
  }
  func.func @transform_0(%arg0: i32) -> (i32, i32) {
    %c0_i32 = arith.constant 0 : i32
    %c0_i32_0 = arith.constant 0 : i32
    return %arg0, %c0_i32 : i32, i32
  }
  func.func @transform_1(%arg0: i32) -> (i32, i32) {
    %c0_i32 = arith.constant 0 : i32
    %c0_i32_0 = arith.constant 0 : i32
    %c0_i32_1 = arith.constant 0 : i32
    return %c0_i32, %c0_i32_0 : i32, i32
  }
  func.func @transform_2(%arg0: i32) -> (i32, i32) {
    %c0_i32 = arith.constant 0 : i32
    %c0_i32_0 = arith.constant 0 : i32
    return %arg0, %c0_i32 : i32, i32
  }
  func.func @transform_3(%arg0: i32) -> (i32, i32) {
    %c0_i32 = arith.constant 0 : i32
    %c0_i32_0 = arith.constant 0 : i32
    %c0_i32_1 = arith.constant 0 : i32
    return %c0_i32, %c0_i32_0 : i32, i32
  }
  func.func @transform_4(%arg0: i32) -> (i32, i32) {
    %c0_i32 = arith.constant 0 : i32
    %c0_i32_0 = arith.constant 0 : i32
    %c0_i32_1 = arith.constant 0 : i32
    return %c0_i32, %c0_i32_0 : i32, i32
  }
  func.func @transform_5(%arg0: i32) -> (i32, i32) {
    %c0_i32 = arith.constant 0 : i32
    %c0_i32_0 = arith.constant 0 : i32
    %c0_i32_1 = arith.constant 0 : i32
    return %c0_i32, %c0_i32_0 : i32, i32
  }
  func.func @transform_6(%arg0: i32) -> (i32, i32) {
    %c0_i32 = arith.constant 0 : i32
    %c0_i32_0 = arith.constant 0 : i32
    return %arg0, %c0_i32 : i32, i32
  }
}

module attributes {stable_mosaic.version = 11 : i64} {
  func.func @_mlp_kernel(%arg0: i32, %arg1: memref<16x128xf32, #tpu.memory_space<vmem>>, %arg2: memref<1x128xf32, #tpu.memory_space<vmem>>, %arg3: memref<16x128xf32, #tpu.memory_space<vmem>>, %arg4: memref<128x128xf32, #tpu.memory_space<vmem>>, %arg5: memref<128x128xf32, #tpu.memory_space<vmem>>, %arg6: memref<128x128xf32, #tpu.memory_space<vmem>>, %arg7: memref<16x128xf32, #tpu.memory_space<vmem>>) attributes {dimension_semantics = [#tpu.dimension_semantics<parallel>], iteration_bounds = array<i64: 1>, scalar_prefetch = 0 : i64, scratch_operands = 0 : i64, tpu.core_type = #tpu.core_type<tc>, window_params = [{transform_indices = @transform_0, window_bounds = array<i64: 16, 128>}, {pipeline_mode = #tpu.pipeline_mode<synchronous>, transform_indices = @transform_1, window_bounds = array<i64: 1, 128>}, {transform_indices = @transform_2, window_bounds = array<i64: 16, 128>}, {pipeline_mode = #tpu.pipeline_mode<synchronous>, transform_indices = @transform_3, window_bounds = array<i64: 128, 128>}, {pipeline_mode = #tpu.pipeline_mode<synchronous>, transform_indices = @transform_4, window_bounds = array<i64: 128, 128>}, {pipeline_mode = #tpu.pipeline_mode<synchronous>, transform_indices = @transform_5, window_bounds = array<i64: 128, 128>}, {transform_indices = @transform_6, window_bounds = array<i64: 16, 128>}]} {
    %c0 = arith.constant 0 : index
    %c0_0 = arith.constant 0 : index
    %0 = vector.load %arg1[%c0, %c0_0] : memref<16x128xf32, #tpu.memory_space<vmem>>, vector<16x128xf32>
    %c0_1 = arith.constant 0 : index
    %c0_2 = arith.constant 0 : index
    %1 = vector.load %arg2[%c0_1, %c0_2] : memref<1x128xf32, #tpu.memory_space<vmem>>, vector<1x128xf32>
    %2 = vector.broadcast %1 : vector<1x128xf32> to vector<16x128xf32>
    %3 = arith.subf %0, %2 : vector<16x128xf32>
    %c0_3 = arith.constant 0 : index
    %c0_4 = arith.constant 0 : index
    %4 = vector.load %arg3[%c0_3, %c0_4] : memref<16x128xf32, #tpu.memory_space<vmem>>, vector<16x128xf32>
    %c0_5 = arith.constant 0 : index
    %c0_6 = arith.constant 0 : index
    %5 = vector.load %arg4[%c0_5, %c0_6] : memref<128x128xf32, #tpu.memory_space<vmem>>, vector<128x128xf32>
    %cst = arith.constant dense<0.000000e+00> : vector<16x128xf32>
    %6 = tpu.matmul %3, %5, %cst {dimension_numbers = #tpu.dot_dimension_numbers<[1], [0], [0], [1], [0, 0, 1, 1], [], []>} : vector<16x128xf32>, vector<128x128xf32>, vector<16x128xf32> -> vector<16x128xf32>
    %c0_7 = arith.constant 0 : index
    %c0_8 = arith.constant 0 : index
    %7 = vector.load %arg5[%c0_7, %c0_8] : memref<128x128xf32, #tpu.memory_space<vmem>>, vector<128x128xf32>
    %cst_9 = arith.constant dense<0.000000e+00> : vector<16x128xf32>
    %8 = tpu.matmul %4, %7, %cst_9 {dimension_numbers = #tpu.dot_dimension_numbers<[1], [0], [0], [1], [0, 0, 1, 1], [], []>} : vector<16x128xf32>, vector<128x128xf32>, vector<16x128xf32> -> vector<16x128xf32>
    %9 = arith.addf %6, %8 : vector<16x128xf32>
    %c0_10 = arith.constant 0 : index
    %c0_11 = arith.constant 0 : index
    %10 = vector.load %arg6[%c0_10, %c0_11] : memref<128x128xf32, #tpu.memory_space<vmem>>, vector<128x128xf32>
    %cst_12 = arith.constant 0.000000e+00 : f32
    %11 = vector.broadcast %cst_12 : f32 to vector<16x128xf32>
    %12 = arith.maximumf %9, %11 : vector<16x128xf32>
    %cst_13 = arith.constant dense<0.000000e+00> : vector<16x128xf32>
    %13 = tpu.matmul %12, %10, %cst_13 {dimension_numbers = #tpu.dot_dimension_numbers<[1], [0], [0], [1], [0, 0, 1, 1], [], []>} : vector<16x128xf32>, vector<128x128xf32>, vector<16x128xf32> -> vector<16x128xf32>
    %c0_14 = arith.constant 0 : index
    %c0_15 = arith.constant 0 : index
    %14 = vector.load %arg7[%c0_14, %c0_15] : memref<16x128xf32, #tpu.memory_space<vmem>>, vector<16x128xf32>
    tpu.vector_store %arg7[%c0_14, %c0_15], %13 {strides = array<i32>} : memref<16x128xf32, #tpu.memory_space<vmem>>, vector<16x128xf32>,
    return
  }
  func.func @transform_0(%arg0: i32) -> (i32, i32) {
    %c0_i32 = arith.constant 0 : i32
    %c0_i32_0 = arith.constant 0 : i32
    return %arg0, %c0_i32 : i32, i32
  }
  func.func @transform_1(%arg0: i32) -> (i32, i32) {
    %c0_i32 = arith.constant 0 : i32
    %c0_i32_0 = arith.constant 0 : i32
    %c0_i32_1 = arith.constant 0 : i32
    return %c0_i32, %c0_i32_0 : i32, i32
  }
  func.func @transform_2(%arg0: i32) -> (i32, i32) {
    %c0_i32 = arith.constant 0 : i32
    %c0_i32_0 = arith.constant 0 : i32
    return %arg0, %c0_i32 : i32, i32
  }
  func.func @transform_3(%arg0: i32) -> (i32, i32) {
    %c0_i32 = arith.constant 0 : i32
    %c0_i32_0 = arith.constant 0 : i32
    %c0_i32_1 = arith.constant 0 : i32
    return %c0_i32, %c0_i32_0 : i32, i32
  }
  func.func @transform_4(%arg0: i32) -> (i32, i32) {
    %c0_i32 = arith.constant 0 : i32
    %c0_i32_0 = arith.constant 0 : i32
    %c0_i32_1 = arith.constant 0 : i32
    return %c0_i32, %c0_i32_0 : i32, i32
  }
  func.func @transform_5(%arg0: i32) -> (i32, i32) {
    %c0_i32 = arith.constant 0 : i32
    %c0_i32_0 = arith.constant 0 : i32
    %c0_i32_1 = arith.constant 0 : i32
    return %c0_i32, %c0_i32_0 : i32, i32
  }
  func.func @transform_6(%arg0: i32) -> (i32, i32) {
    %c0_i32 = arith.constant 0 : i32
    %c0_i32_0 = arith.constant 0 : i32
    return %arg0, %c0_i32 : i32, i32
  }
}

</mosaic_0001>

<bundles_post_ra>
// kernel: tpu_custom_call.1
= control target key start
LH: loop header
LB: loop body
LE: loop exit
PB: predicated region body
PF: predicated region fallthrough
CT: control target
= control target key end

     0   :  { %11 = vsyncpa [#allocation3], 0  ;;  %s556_s0 = inlined_call_operand.hbm [shape: f32[16,128], index: 0, kind: input, shape index: {}]   ;;  %s557_s1 = inlined_call_operand.hbm [shape: f32[1,128], index: 1, kind: input, shape index: {}]   ;;  %s558_s2 = inlined_call_operand.hbm [shape: f32[16,128], index: 2, kind: input, shape index: {}]   ;;  %s559_s3 = inlined_call_operand.hbm [shape: f32[128,128], index: 3, kind: input, shape index: {}]   ;;  %s560_s4 = inlined_call_operand.hbm [shape: f32[128,128], index: 4, kind: input, shape index: {}]   ;;  %s561_s5 = inlined_call_operand.hbm [shape: f32[128,128], index: 5, kind: input, shape index: {}]   ;;  %s562_s6 = inlined_call_operand.hbm [shape: f32[16,128], index: 6, kind: output, shape index: {}]  }
   0x1   :  { %12 = vsyncpa [#allocation6], 0 }
   0x2   :  { %13 = vsyncpa [#allocation9], 0 }
   0x3   :  { %14 = vsyncpa [#allocation12], 0  ;;  %s34_s23 = sshll.u32 %s557_s1, 4  ;;  %s35_s23 = int_to_ptr.hbm [resolvable:$true] %s34_s23 }
   0x4   :  { %15 = vsyncpa [#allocation4], 0  ;;  %s473_s24 = smov [#allocation5]   ;;  %s57_s28 = sshll.u32 %s559_s3, 4  ;;  %s58_s28 = int_to_ptr.hbm [resolvable:$true] %s57_s28 }
   0x5   :  { %s36_s25 = sshll.u32 %s473_s24, 4  ;;  %s474_s29 = smov [#allocation8]   ;;  %s37_s25 = int_to_ptr.vmem [resolvable:$true] %s36_s25 }
   0x6   :  { %39 = dma.hbm_to_vmem [thread:$0]  %s35_s23, 16, %s37_s25, [#allocation6]  }
   0x7   :  { %s59_s30 = sshll.u32 %s474_s29, 4  ;;  %s20_s9 = sshll.u32 %s556_s0, 4  ;;  %s60_s30 = int_to_ptr.vmem [resolvable:$true] %s59_s30  ;;  %s21_s9 = int_to_ptr.hbm [resolvable:$true] %s20_s9 }
   0x8   :  { %s475_s1 = smov 128   ;;  %s476_s10 = smov 8  }
   0x9   :  { %65 = dma.hbm_to_vmem [thread:$0]  %s58_s28, 2048, %s60_s30, [#allocation9], %s475_s1, %s475_s1, %s476_s10  }
   0xa   :  { %s44_s13 = sshll.u32 %s558_s2, 4  ;;  %s477_s3 = smov [#allocation2]   ;;  %s45_s13 = int_to_ptr.hbm [resolvable:$true] %s44_s13 }
   0xb   :  { %s22_s14 = sshll.u32 %s477_s3, 4  ;;  %s478_s0 = smov [#allocation7]   ;;  %s23_s14 = int_to_ptr.vmem [resolvable:$true] %s22_s14 }
   0xc   :  { %28 = dma.hbm_to_vmem [thread:$0]  %s21_s9, 256, %s23_s14, [#allocation3], %s475_s1, %s475_s1, %s476_s10  }
   0xd   :  { %s46_s15 = sshll.u32 %s478_s0, 4  ;;  %s70_s18 = sshll.u32 %s560_s4, 4  ;;  %s47_s15 = int_to_ptr.vmem [resolvable:$true] %s46_s15  ;;  %s71_s18 = int_to_ptr.hbm [resolvable:$true] %s70_s18 }
   0xe   :  { %52 = dma.hbm_to_vmem [thread:$0]  %s45_s13, 256, %s47_s15, [#allocation6], %s475_s1, %s475_s1, %s476_s10  }
   0xf   :  { %s83_s20 = sshll.u32 %s561_s5, 4  ;;  %s479_s21 = smov [#allocation10]   ;;  %s84_s20 = int_to_ptr.hbm [resolvable:$true] %s83_s20 }
  0x10   :  { %s72_s22 = sshll.u32 %s479_s21, 4  ;;  %s480_s23 = smov [#allocation11]   ;;  %s73_s22 = int_to_ptr.vmem [resolvable:$true] %s72_s22 }
  0x11   :  { %78 = dma.hbm_to_vmem [thread:$0]  %s71_s18, 2048, %s73_s22, [#allocation9], %s475_s1, %s475_s1, %s476_s10  }
  0x12   :  { %s85_s4 = sshll.u32 %s480_s23, 4  ;;  %s86_s4 = int_to_ptr.vmem [resolvable:$true] %s85_s4 }
  0x13   :  { %91 = dma.hbm_to_vmem [thread:$0]  %s84_s20, 2048, %s86_s4, [#allocation12], %s475_s1, %s475_s1, %s476_s10  }
  0x14   :  { %463 = dma.done.wait [#allocation3], 256  }
  0x15   :  { %464 = vsyncadd [#allocation3], 4294967040 }
  0x16   :  { %465 = dma.done.wait [#allocation6], 272  }
  0x17   :  { %466 = vsyncadd [#allocation6], 4294967024 }
  0x18   :  { %467 = dma.done.wait [#allocation9], 4096  }
  0x19   :  { %468 = vsyncadd [#allocation9], 4294963200 }
  0x1a   :  { %469 = dma.done.wait [#allocation12], 2048  }
  0x1b   :  { %470 = vsyncadd [#allocation12], 4294965248  ;;  %v157_v0 = vld [vmem:[#allocation10 + $0x78] sm:$0xff]  ;;  %v156_v2 = vld [vmem:[#allocation10 + $0x70] sm:$0xff]  ;;  %s481_s5 = smov [#allocation13]   ;;  %s253_s27 = sshll.u32 %s562_s6, 4  ;;  %s254_s27 = int_to_ptr.hbm [resolvable:$true] %s253_s27 }
  0x1c   :  { %v141_v1 = vld [vmem:[#allocation8 + $0x78] sm:$0xff]  ;;  %158 = vmatpush.msra.mxu0 %v157_v0  ;;  %v140_v3 = vld [vmem:[#allocation8 + $0x70] sm:$0xff]  ;;  %269 = vmatpush.msra.mxu3 %v157_v0  ;;  %v155_v4 = vld [vmem:[#allocation10 + $0x68] sm:$0xff]  ;;  %s251_s24 = sshll.u32 %s481_s5, 4  ;;  %s252_s24 = int_to_ptr.vmem [resolvable:$true] %s251_s24 }
  0x1d   :  { %181 = vmatpush.msra.mxu1 %v141_v1  ;;  %v139_v5 = vld [vmem:[#allocation8 + $0x68] sm:$0xff]  ;;  %v154_v6 = vld [vmem:[#allocation10 + $0x60] sm:$0xff]  ;;  %v153_v8 = vld [vmem:[#allocation10 + $0x58] sm:$0xff] }
  0x1e   :  { %159 = vmatpush.msra.mxu0 %v156_v2  ;;  %270 = vmatpush.msra.mxu3 %v156_v2  ;;  %v138_v7 = vld [vmem:[#allocation8 + $0x60] sm:$0xff]  ;;  %v137_v9 = vld [vmem:[#allocation8 + $0x58] sm:$0xff]  ;;  %v152_v10 = vld [vmem:[#allocation10 + $0x50] sm:$0xff] }
  0x1f   :  { %182 = vmatpush.msra.mxu1 %v140_v3  ;;  %v136_v11 = vld [vmem:[#allocation8 + $0x50] sm:$0xff]  ;;  %v151_v12 = vld [vmem:[#allocation10 + $0x48] sm:$0xff]  ;;  %v150_v14 = vld [vmem:[#allocation10 + $0x40] sm:$0xff] }
  0x20   :  { %160 = vmatpush.msra.mxu0 %v155_v4  ;;  %271 = vmatpush.msra.mxu3 %v155_v4  ;;  %v135_v13 = vld [vmem:[#allocation8 + $0x48] sm:$0xff]  ;;  %v134_v15 = vld [vmem:[#allocation8 + $0x40] sm:$0xff]  ;;  %v219_v16 = vld [vmem:[#allocation11 + $0x78] sm:$0xff] }
  0x21   :  { %183 = vmatpush.msra.mxu1 %v139_v5  ;;  %v218_v17 = vld [vmem:[#allocation11 + $0x70] sm:$0xff]  ;;  %v149_v18 = vld [vmem:[#allocation10 + $0x38] sm:$0xff]  ;;  %222 = vmatpush.msra.mxu2 %v219_v16  ;;  %v217_v20 = vld [vmem:[#allocation11 + $0x68] sm:$0xff] }
  0x22   :  { %161 = vmatpush.msra.mxu0 %v154_v6  ;;  %272 = vmatpush.msra.mxu3 %v154_v6  ;;  %v133_v19 = vld [vmem:[#allocation8 + $0x38] sm:$0xff]  ;;  %v148_v21 = vld [vmem:[#allocation10 + $0x30] sm:$0xff]  ;;  %v216_v23 = vld [vmem:[#allocation11 + $0x60] sm:$0xff] }
  0x23   :  { %184 = vmatpush.msra.mxu1 %v138_v7  ;;  %v132_v22 = vld [vmem:[#allocation8 + $0x30] sm:$0xff]  ;;  %223 = vmatpush.msra.mxu2 %v218_v17  ;;  %v147_v24 = vld [vmem:[#allocation10 + $0x28] sm:$0xff]  ;;  %v215_v26 = vld [vmem:[#allocation11 + $0x58] sm:$0xff] }
  0x24   :  { %162 = vmatpush.msra.mxu0 %v153_v8  ;;  %273 = vmatpush.msra.mxu3 %v153_v8  ;;  %v131_v25 = vld [vmem:[#allocation8 + $0x28] sm:$0xff]  ;;  %v146_v27 = vld [vmem:[#allocation10 + $0x20] sm:$0xff]  ;;  %v214_v29 = vld [vmem:[#allocation11 + $0x50] sm:$0xff] }
  0x25   :  { %185 = vmatpush.msra.mxu1 %v137_v9  ;;  %224 = vmatpush.msra.mxu2 %v217_v20  ;;  %v130_v28 = vld [vmem:[#allocation8 + $0x20] sm:$0xff]  ;;  %v145_v30 = vld [vmem:[#allocation10 + $0x18] sm:$0xff]  ;;  %v213_v32 = vld [vmem:[#allocation11 + $0x48] sm:$0xff] }
  0x26   :  { %163 = vmatpush.msra.mxu0 %v152_v10  ;;  %274 = vmatpush.msra.mxu3 %v152_v10  ;;  %v129_v31 = vld [vmem:[#allocation8 + $0x18] sm:$0xff]  ;;  %v144_v33 = vld [vmem:[#allocation10 + $0x10] sm:$0xff]  ;;  %v294_v35 = vld [vmem:[#allocation5] ss:$0 sm:$0xff] }
  0x27   :  { %186 = vmatpush.msra.mxu1 %v136_v11  ;;  %225 = vmatpush.msra.mxu2 %v216_v23  ;;  %v128_v34 = vld [vmem:[#allocation8 + $0x10] sm:$0xff]  ;;  %v116_v36 = vld [vmem:[#allocation2] sm:$0xff]  ;;  %v143_v38 = vld [vmem:[#allocation10 + $0x8] sm:$0xff] }
  0x28   :  { %164 = vmatpush.msra.mxu0 %v151_v12  ;;  %275 = vmatpush.msra.mxu3 %v151_v12  ;;  %v212_v37 = vld [vmem:[#allocation11 + $0x40] sm:$0xff]  ;;  %v127_v39 = vld [vmem:[#allocation8 + $0x8] sm:$0xff]  ;;  %v211_v40 = vld [vmem:[#allocation11 + $0x38] sm:$0xff]  ;;  %v122_v43 = vsub.f32 %v116_v36, %v294_v35 }
  0x29   :  { %187 = vmatpush.msra.mxu1 %v135_v13  ;;  %226 = vmatpush.msra.mxu2 %v215_v26  ;;  %v142_v41 = vld [vmem:[#allocation10] sm:$0xff]  ;;  %v124_v44 = vld [vmem:[#allocation7] sm:$0xff]  ;;  %v125_v46 = vld [vmem:[#allocation7 + $0x8] sm:$0xff] }
  0x2a   :  { %165 = vmatpush.msra.mxu0 %v150_v14  ;;  %276 = vmatpush.msra.mxu3 %v150_v14  ;;  %v126_v42 = vld [vmem:[#allocation8] sm:$0xff]  ;;  %v210_v45 = vld [vmem:[#allocation11 + $0x30] sm:$0xff]  ;;  %v209_v47 = vld [vmem:[#allocation11 + $0x28] sm:$0xff] }
  0x2b   :  { %188 = vmatpush.msra.mxu1 %v134_v15  ;;  %227 = vmatpush.msra.mxu2 %v214_v29  ;;  %v117_v48 = vld [vmem:[#allocation2 + $0x8] sm:$0xff]  ;;  %v207_v51 = vld [vmem:[#allocation11 + $0x18] sm:$0xff]  ;;  %v206_v52 = vld [vmem:[#allocation11 + $0x10] sm:$0xff] }
  0x2c   :  { %166 = vmatpush.msra.mxu0 %v149_v18  ;;  %277 = vmatpush.msra.mxu3 %v149_v18  ;;  %v208_v49 = vld [vmem:[#allocation11 + $0x20] sm:$0xff]  ;;  %v123_v50 = vsub.f32 %v117_v48, %v294_v35  ;;  %v205_v53 = vld [vmem:[#allocation11 + $0x8] sm:$0xff] }
  0x2d   :  { %189 = vmatpush.msra.mxu1 %v133_v19  ;;  %228 = vmatpush.msra.mxu2 %v213_v32  ;;  %v204_v54 = vld [vmem:[#allocation11] sm:$0xff] }
  0x2e   :  { %167 = vmatpush.msra.mxu0 %v148_v21  ;;  %278 = vmatpush.msra.mxu3 %v148_v21 }
  0x2f   :  { %190 = vmatpush.msra.mxu1 %v132_v22  ;;  %229 = vmatpush.msra.mxu2 %v212_v37 }
  0x30   :  { %168 = vmatpush.msra.mxu0 %v147_v24  ;;  %279 = vmatpush.msra.mxu3 %v147_v24 }
  0x31   :  { %191 = vmatpush.msra.mxu1 %v131_v25  ;;  %230 = vmatpush.msra.mxu2 %v211_v40 }
  0x32   :  { %169 = vmatpush.msra.mxu0 %v146_v27  ;;  %280 = vmatpush.msra.mxu3 %v146_v27 }
  0x33   :  { %192 = vmatpush.msra.mxu1 %v130_v28  ;;  %231 = vmatpush.msra.mxu2 %v210_v45 }
  0x34   :  { %170 = vmatpush.msra.mxu0 %v145_v30  ;;  %281 = vmatpush.msra.mxu3 %v145_v30 }
  0x35   :  { %193 = vmatpush.msra.mxu1 %v129_v31  ;;  %232 = vmatpush.msra.mxu2 %v209_v47 }
  0x36   :  { %171 = vmatpush.msra.mxu0 %v144_v33  ;;  %282 = vmatpush.msra.mxu3 %v144_v33 }
  0x37   :  { %194 = vmatpush.msra.mxu1 %v128_v34  ;;  %233 = vmatpush.msra.mxu2 %v208_v49 }
  0x38   :  { %172 = vmatpush.msra.mxu0 %v143_v38  ;;  %283 = vmatpush.msra.mxu3 %v143_v38 }
  0x39   :  { %195 = vmatpush.msra.mxu1 %v127_v39  ;;  %234 = vmatpush.msra.mxu2 %v207_v51 }
  0x3a   :  { %173 = vmatpush.msra.mxu0 %v142_v41  ;;  %284 = vmatpush.msra.mxu3 %v142_v41 }
  0x3b   :  { %196 = vmatpush.msra.mxu1 %v126_v42  ;;  %174 = vmatmul.f32.vlgmr.msra.gmra.mxu0 %v124_v44 }
  0x3c   :  { %197 = vmatmul.f32.vlgmr.msra.gmra.mxu1 %v122_v43  ;;  %177 = vmatmul.f32.vlgmr.msra.gmra.mxu3 %v125_v46 }
  0x3d   :  { %235 = vmatpush.msra.mxu2 %v206_v52 }
  0x3f   :  { %236 = vmatpush.msra.mxu2 %v205_v53 }
  0x41   :  { %237 = vmatpush.msra.mxu2 %v204_v54 }
  0x44   :  { %200 = vmatmul.f32.gmra.mxu1 %v123_v50 }
  0xb8   :  { %v175_v55 = vpop.f32.mrf.mxu0 }
  0xb9   :  { %v198_v56 = vpop.f32.mrf.mxu1 }
  0xba   :  { %v199_v57 = vadd.f32 %v198_v56, %v175_v55 }
  0xbc   :  { %v220_v58 = vmax.f32 %v199_v57, 0.0 }
  0xbe   :  { %238 = vmatmul.f32.vlgmr.msra.gmra.mxu2 %v220_v58 }
  0xbf   :  { %v178_v59 = vpop.f32.mrf.mxu3 }
  0xc1   :  { %v201_v60 = vpop.f32.mrf.mxu1 }
  0xc2   :  { %v202_v61 = vadd.f32 %v201_v60, %v178_v59 }
  0xc4   :  { %v221_v62 = vmax.f32 %v202_v61, 0.0 }
  0xc6   :  { %241 = vmatmul.f32.gmra.mxu2 %v221_v62 }
 0x141   :  { %v239_v63 = vpop.f32.mrf.mxu2 }
 0x142   :  { %245 = vst [vmem:[#allocation13] sm:$0xff] %v239_v63 }
 0x149   :  { %v242_v0 = vpop.f32.mrf.mxu2 }
 0x14a   :  { %246 = vst [vmem:[#allocation13 + $0x8] sm:$0xff] %v242_v0 }
 0x14b   :  { %259 = dma.vmem_to_hbm [thread:$0]  %s252_s24, 256, %s254_s27, [#allocation4], %s475_s1, %s475_s1, %s476_s10  }
 0x14c   :  { %471 = dma.done.wait [#allocation4], 256  }
 0x14d   :  { %472 = vsyncadd [#allocation4], 4294967040 }
 0x14e   :  { %264 = vsyncpa [#allocation3], 1 }
 0x14f   :  { %265 = vsyncpa [#allocation6], 1 }
 0x150   :  { %266 = vsyncpa [#allocation9], 1 }
 0x151   :  { %267 = vsyncpa [#allocation12], 1 }
 0x152   :  { %268 = vsyncpa [#allocation4], 1 }

// kernel: tpu_custom_call.1
= control target key start
LH: loop header
LB: loop body
LE: loop exit
PB: predicated region body
PF: predicated region fallthrough
CT: control target
= control target key end

     0   :  { %11 = vsyncpa [#allocation3], 0  ;;  %s556_s0 = inlined_call_operand.hbm [shape: f32[16,128], index: 0, kind: input, shape index: {}]   ;;  %s557_s1 = inlined_call_operand.hbm [shape: f32[1,128], index: 1, kind: input, shape index: {}]   ;;  %s558_s2 = inlined_call_operand.hbm [shape: f32[16,128], index: 2, kind: input, shape index: {}]   ;;  %s559_s3 = inlined_call_operand.hbm [shape: f32[128,128], index: 3, kind: input, shape index: {}]   ;;  %s560_s4 = inlined_call_operand.hbm [shape: f32[128,128], index: 4, kind: input, shape index: {}]   ;;  %s561_s5 = inlined_call_operand.hbm [shape: f32[128,128], index: 5, kind: input, shape index: {}]   ;;  %s562_s6 = inlined_call_operand.hbm [shape: f32[16,128], index: 6, kind: output, shape index: {}]  }
   0x1   :  { %12 = vsyncpa [#allocation6], 0 }
   0x2   :  { %13 = vsyncpa [#allocation9], 0 }
   0x3   :  { %14 = vsyncpa [#allocation12], 0  ;;  %s34_s23 = sshll.u32 %s557_s1, 4  ;;  %s35_s23 = int_to_ptr.hbm [resolvable:$true] %s34_s23 }
   0x4   :  { %15 = vsyncpa [#allocation4], 0  ;;  %s473_s24 = smov [#allocation5]   ;;  %s57_s28 = sshll.u32 %s559_s3, 4  ;;  %s58_s28 = int_to_ptr.hbm [resolvable:$true] %s57_s28 }
   0x5   :  { %s36_s25 = sshll.u32 %s473_s24, 4  ;;  %s474_s29 = smov [#allocation8]   ;;  %s37_s25 = int_to_ptr.vmem [resolvable:$true] %s36_s25 }
   0x6   :  { %39 = dma.hbm_to_vmem [thread:$0]  %s35_s23, 16, %s37_s25, [#allocation6]  }
   0x7   :  { %s59_s30 = sshll.u32 %s474_s29, 4  ;;  %s20_s9 = sshll.u32 %s556_s0, 4  ;;  %s60_s30 = int_to_ptr.vmem [resolvable:$true] %s59_s30  ;;  %s21_s9 = int_to_ptr.hbm [resolvable:$true] %s20_s9 }
   0x8   :  { %s475_s1 = smov 128   ;;  %s476_s10 = smov 8  }
   0x9   :  { %65 = dma.hbm_to_vmem [thread:$0]  %s58_s28, 2048, %s60_s30, [#allocation9], %s475_s1, %s475_s1, %s476_s10  }
   0xa   :  { %s44_s13 = sshll.u32 %s558_s2, 4  ;;  %s477_s3 = smov [#allocation2]   ;;  %s45_s13 = int_to_ptr.hbm [resolvable:$true] %s44_s13 }
   0xb   :  { %s22_s14 = sshll.u32 %s477_s3, 4  ;;  %s478_s0 = smov [#allocation7]   ;;  %s23_s14 = int_to_ptr.vmem [resolvable:$true] %s22_s14 }
   0xc   :  { %28 = dma.hbm_to_vmem [thread:$0]  %s21_s9, 256, %s23_s14, [#allocation3], %s475_s1, %s475_s1, %s476_s10  }
   0xd   :  { %s46_s15 = sshll.u32 %s478_s0, 4  ;;  %s70_s18 = sshll.u32 %s560_s4, 4  ;;  %s47_s15 = int_to_ptr.vmem [resolvable:$true] %s46_s15  ;;  %s71_s18 = int_to_ptr.hbm [resolvable:$true] %s70_s18 }
   0xe   :  { %52 = dma.hbm_to_vmem [thread:$0]  %s45_s13, 256, %s47_s15, [#allocation6], %s475_s1, %s475_s1, %s476_s10  }
   0xf   :  { %s83_s20 = sshll.u32 %s561_s5, 4  ;;  %s479_s21 = smov [#allocation10]   ;;  %s84_s20 = int_to_ptr.hbm [resolvable:$true] %s83_s20 }
  0x10   :  { %s72_s22 = sshll.u32 %s479_s21, 4  ;;  %s480_s23 = smov [#allocation11]   ;;  %s73_s22 = int_to_ptr.vmem [resolvable:$true] %s72_s22 }
  0x11   :  { %78 = dma.hbm_to_vmem [thread:$0]  %s71_s18, 2048, %s73_s22, [#allocation9], %s475_s1, %s475_s1, %s476_s10  }
  0x12   :  { %s85_s4 = sshll.u32 %s480_s23, 4  ;;  %s86_s4 = int_to_ptr.vmem [resolvable:$true] %s85_s4 }
  0x13   :  { %91 = dma.hbm_to_vmem [thread:$0]  %s84_s20, 2048, %s86_s4, [#allocation12], %s475_s1, %s475_s1, %s476_s10  }
  0x14   :  { %463 = dma.done.wait [#allocation3], 256  }
  0x15   :  { %464 = vsyncadd [#allocation3], 4294967040 }
  0x16   :  { %465 = dma.done.wait [#allocation6], 272  }
  0x17   :  { %466 = vsyncadd [#allocation6], 4294967024 }
  0x18   :  { %467 = dma.done.wait [#allocation9], 4096  }
  0x19   :  { %468 = vsyncadd [#allocation9], 4294963200 }
  0x1a   :  { %469 = dma.done.wait [#allocation12], 2048  }
  0x1b   :  { %470 = vsyncadd [#allocation12], 4294965248  ;;  %v157_v0 = vld [vmem:[#allocation10 + $0x78] sm:$0xff]  ;;  %v156_v2 = vld [vmem:[#allocation10 + $0x70] sm:$0xff]  ;;  %s481_s5 = smov [#allocation13]   ;;  %s253_s27 = sshll.u32 %s562_s6, 4  ;;  %s254_s27 = int_to_ptr.hbm [resolvable:$true] %s253_s27 }
  0x1c   :  { %v141_v1 = vld [vmem:[#allocation8 + $0x78] sm:$0xff]  ;;  %158 = vmatpush.msra.mxu0 %v157_v0  ;;  %v140_v3 = vld [vmem:[#allocation8 + $0x70] sm:$0xff]  ;;  %269 = vmatpush.msra.mxu3 %v157_v0  ;;  %v155_v4 = vld [vmem:[#allocation10 + $0x68] sm:$0xff]  ;;  %s251_s24 = sshll.u32 %s481_s5, 4  ;;  %s252_s24 = int_to_ptr.vmem [resolvable:$true] %s251_s24 }
  0x1d   :  { %181 = vmatpush.msra.mxu1 %v141_v1  ;;  %v139_v5 = vld [vmem:[#allocation8 + $0x68] sm:$0xff]  ;;  %v154_v6 = vld [vmem:[#allocation10 + $0x60] sm:$0xff]  ;;  %v153_v8 = vld [vmem:[#allocation10 + $0x58] sm:$0xff] }
  0x1e   :  { %159 = vmatpush.msra.mxu0 %v156_v2  ;;  %270 = vmatpush.msra.mxu3 %v156_v2  ;;  %v138_v7 = vld [vmem:[#allocation8 + $0x60] sm:$0xff]  ;;  %v137_v9 = vld [vmem:[#allocation8 + $0x58] sm:$0xff]  ;;  %v152_v10 = vld [vmem:[#allocation10 + $0x50] sm:$0xff] }
  0x1f   :  { %182 = vmatpush.msra.mxu1 %v140_v3  ;;  %v136_v11 = vld [vmem:[#allocation8 + $0x50] sm:$0xff]  ;;  %v151_v12 = vld [vmem:[#allocation10 + $0x48] sm:$0xff]  ;;  %v150_v14 = vld [vmem:[#allocation10 + $0x40] sm:$0xff] }
  0x20   :  { %160 = vmatpush.msra.mxu0 %v155_v4  ;;  %271 = vmatpush.msra.mxu3 %v155_v4  ;;  %v135_v13 = vld [vmem:[#allocation8 + $0x48] sm:$0xff]  ;;  %v134_v15 = vld [vmem:[#allocation8 + $0x40] sm:$0xff]  ;;  %v219_v16 = vld [vmem:[#allocation11 + $0x78] sm:$0xff] }
  0x21   :  { %183 = vmatpush.msra.mxu1 %v139_v5  ;;  %v218_v17 = vld [vmem:[#allocation11 + $0x70] sm:$0xff]  ;;  %v149_v18 = vld [vmem:[#allocation10 + $0x38] sm:$0xff]  ;;  %222 = vmatpush.msra.mxu2 %v219_v16  ;;  %v217_v20 = vld [vmem:[#allocation11 + $0x68] sm:$0xff] }
  0x22   :  { %161 = vmatpush.msra.mxu0 %v154_v6  ;;  %272 = vmatpush.msra.mxu3 %v154_v6  ;;  %v133_v19 = vld [vmem:[#allocation8 + $0x38] sm:$0xff]  ;;  %v148_v21 = vld [vmem:[#allocation10 + $0x30] sm:$0xff]  ;;  %v216_v23 = vld [vmem:[#allocation11 + $0x60] sm:$0xff] }
  0x23   :  { %184 = vmatpush.msra.mxu1 %v138_v7  ;;  %v132_v22 = vld [vmem:[#allocation8 + $0x30] sm:$0xff]  ;;  %223 = vmatpush.msra.mxu2 %v218_v17  ;;  %v147_v24 = vld [vmem:[#allocation10 + $0x28] sm:$0xff]  ;;  %v215_v26 = vld [vmem:[#allocation11 + $0x58] sm:$0xff] }
  0x24   :  { %162 = vmatpush.msra.mxu0 %v153_v8  ;;  %273 = vmatpush.msra.mxu3 %v153_v8  ;;  %v131_v25 = vld [vmem:[#allocation8 + $0x28] sm:$0xff]  ;;  %v146_v27 = vld [vmem:[#allocation10 + $0x20] sm:$0xff]  ;;  %v214_v29 = vld [vmem:[#allocation11 + $0x50] sm:$0xff] }
  0x25   :  { %185 = vmatpush.msra.mxu1 %v137_v9  ;;  %224 = vmatpush.msra.mxu2 %v217_v20  ;;  %v130_v28 = vld [vmem:[#allocation8 + $0x20] sm:$0xff]  ;;  %v145_v30 = vld [vmem:[#allocation10 + $0x18] sm:$0xff]  ;;  %v213_v32 = vld [vmem:[#allocation11 + $0x48] sm:$0xff] }
  0x26   :  { %163 = vmatpush.msra.mxu0 %v152_v10  ;;  %274 = vmatpush.msra.mxu3 %v152_v10  ;;  %v129_v31 = vld [vmem:[#allocation8 + $0x18] sm:$0xff]  ;;  %v144_v33 = vld [vmem:[#allocation10 + $0x10] sm:$0xff]  ;;  %v294_v35 = vld [vmem:[#allocation5] ss:$0 sm:$0xff] }
  0x27   :  { %186 = vmatpush.msra.mxu1 %v136_v11  ;;  %225 = vmatpush.msra.mxu2 %v216_v23  ;;  %v128_v34 = vld [vmem:[#allocation8 + $0x10] sm:$0xff]  ;;  %v116_v36 = vld [vmem:[#allocation2] sm:$0xff]  ;;  %v143_v38 = vld [vmem:[#allocation10 + $0x8] sm:$0xff] }
  0x28   :  { %164 = vmatpush.msra.mxu0 %v151_v12  ;;  %275 = vmatpush.msra.mxu3 %v151_v12  ;;  %v212_v37 = vld [vmem:[#allocation11 + $0x40] sm:$0xff]  ;;  %v127_v39 = vld [vmem:[#allocation8 + $0x8] sm:$0xff]  ;;  %v211_v40 = vld [vmem:[#allocation11 + $0x38] sm:$0xff]  ;;  %v122_v43 = vsub.f32 %v116_v36, %v294_v35 }
  0x29   :  { %187 = vmatpush.msra.mxu1 %v135_v13  ;;  %226 = vmatpush.msra.mxu2 %v215_v26  ;;  %v142_v41 = vld [vmem:[#allocation10] sm:$0xff]  ;;  %v124_v44 = vld [vmem:[#allocation7] sm:$0xff]  ;;  %v125_v46 = vld [vmem:[#allocation7 + $0x8] sm:$0xff] }
  0x2a   :  { %165 = vmatpush.msra.mxu0 %v150_v14  ;;  %276 = vmatpush.msra.mxu3 %v150_v14  ;;  %v126_v42 = vld [vmem:[#allocation8] sm:$0xff]  ;;  %v210_v45 = vld [vmem:[#allocation11 + $0x30] sm:$0xff]  ;;  %v209_v47 = vld [vmem:[#allocation11 + $0x28] sm:$0xff] }
  0x2b   :  { %188 = vmatpush.msra.mxu1 %v134_v15  ;;  %227 = vmatpush.msra.mxu2 %v214_v29  ;;  %v117_v48 = vld [vmem:[#allocation2 + $0x8] sm:$0xff]  ;;  %v207_v51 = vld [vmem:[#allocation11 + $0x18] sm:$0xff]  ;;  %v206_v52 = vld [vmem:[#allocation11 + $0x10] sm:$0xff] }
  0x2c   :  { %166 = vmatpush.msra.mxu0 %v149_v18  ;;  %277 = vmatpush.msra.mxu3 %v149_v18  ;;  %v208_v49 = vld [vmem:[#allocation11 + $0x20] sm:$0xff]  ;;  %v123_v50 = vsub.f32 %v117_v48, %v294_v35  ;;  %v205_v53 = vld [vmem:[#allocation11 + $0x8] sm:$0xff] }
  0x2d   :  { %189 = vmatpush.msra.mxu1 %v133_v19  ;;  %228 = vmatpush.msra.mxu2 %v213_v32  ;;  %v204_v54 = vld [vmem:[#allocation11] sm:$0xff] }
  0x2e   :  { %167 = vmatpush.msra.mxu0 %v148_v21  ;;  %278 = vmatpush.msra.mxu3 %v148_v21 }
  0x2f   :  { %190 = vmatpush.msra.mxu1 %v132_v22  ;;  %229 = vmatpush.msra.mxu2 %v212_v37 }
  0x30   :  { %168 = vmatpush.msra.mxu0 %v147_v24  ;;  %279 = vmatpush.msra.mxu3 %v147_v24 }
  0x31   :  { %191 = vmatpush.msra.mxu1 %v131_v25  ;;  %230 = vmatpush.msra.mxu2 %v211_v40 }
  0x32   :  { %169 = vmatpush.msra.mxu0 %v146_v27  ;;  %280 = vmatpush.msra.mxu3 %v146_v27 }
  0x33   :  { %192 = vmatpush.msra.mxu1 %v130_v28  ;;  %231 = vmatpush.msra.mxu2 %v210_v45 }
  0x34   :  { %170 = vmatpush.msra.mxu0 %v145_v30  ;;  %281 = vmatpush.msra.mxu3 %v145_v30 }
  0x35   :  { %193 = vmatpush.msra.mxu1 %v129_v31  ;;  %232 = vmatpush.msra.mxu2 %v209_v47 }
  0x36   :  { %171 = vmatpush.msra.mxu0 %v144_v33  ;;  %282 = vmatpush.msra.mxu3 %v144_v33 }
  0x37   :  { %194 = vmatpush.msra.mxu1 %v128_v34  ;;  %233 = vmatpush.msra.mxu2 %v208_v49 }
  0x38   :  { %172 = vmatpush.msra.mxu0 %v143_v38  ;;  %283 = vmatpush.msra.mxu3 %v143_v38 }
  0x39   :  { %195 = vmatpush.msra.mxu1 %v127_v39  ;;  %234 = vmatpush.msra.mxu2 %v207_v51 }
  0x3a   :  { %173 = vmatpush.msra.mxu0 %v142_v41  ;;  %284 = vmatpush.msra.mxu3 %v142_v41 }
  0x3b   :  { %196 = vmatpush.msra.mxu1 %v126_v42  ;;  %174 = vmatmul.f32.vlgmr.msra.gmra.mxu0 %v124_v44 }
  0x3c   :  { %197 = vmatmul.f32.vlgmr.msra.gmra.mxu1 %v122_v43  ;;  %177 = vmatmul.f32.vlgmr.msra.gmra.mxu3 %v125_v46 }
  0x3d   :  { %235 = vmatpush.msra.mxu2 %v206_v52 }
  0x3f   :  { %236 = vmatpush.msra.mxu2 %v205_v53 }
  0x41   :  { %237 = vmatpush.msra.mxu2 %v204_v54 }
  0x44   :  { %200 = vmatmul.f32.gmra.mxu1 %v123_v50 }
  0xb8   :  { %v175_v55 = vpop.f32.mrf.mxu0 }
  0xb9   :  { %v198_v56 = vpop.f32.mrf.mxu1 }
  0xba   :  { %v199_v57 = vadd.f32 %v198_v56, %v175_v55 }
  0xbc   :  { %v220_v58 = vmax.f32 %v199_v57, 0.0 }
  0xbe   :  { %238 = vmatmul.f32.vlgmr.msra.gmra.mxu2 %v220_v58 }
  0xbf   :  { %v178_v59 = vpop.f32.mrf.mxu3 }
  0xc1   :  { %v201_v60 = vpop.f32.mrf.mxu1 }
  0xc2   :  { %v202_v61 = vadd.f32 %v201_v60, %v178_v59 }
  0xc4   :  { %v221_v62 = vmax.f32 %v202_v61, 0.0 }
  0xc6   :  { %241 = vmatmul.f32.gmra.mxu2 %v221_v62 }
 0x141   :  { %v239_v63 = vpop.f32.mrf.mxu2 }
 0x142   :  { %245 = vst [vmem:[#allocation13] sm:$0xff] %v239_v63 }
 0x149   :  { %v242_v0 = vpop.f32.mrf.mxu2 }
 0x14a   :  { %246 = vst [vmem:[#allocation13 + $0x8] sm:$0xff] %v242_v0 }
 0x14b   :  { %259 = dma.vmem_to_hbm [thread:$0]  %s252_s24, 256, %s254_s27, [#allocation4], %s475_s1, %s475_s1, %s476_s10  }
 0x14c   :  { %471 = dma.done.wait [#allocation4], 256  }
 0x14d   :  { %472 = vsyncadd [#allocation4], 4294967040 }
 0x14e   :  { %264 = vsyncpa [#allocation3], 1 }
 0x14f   :  { %265 = vsyncpa [#allocation6], 1 }
 0x150   :  { %266 = vsyncpa [#allocation9], 1 }
 0x151   :  { %267 = vsyncpa [#allocation12], 1 }
 0x152   :  { %268 = vsyncpa [#allocation4], 1 }

</bundles_post_ra>
